<compile_context>
chip_gen: v5e
topology: v5e:2x2
jax: 0.10.0
libtpu: 0.0.40
codegen_flags: <defaults>
</compile_context>

<pallas_src>
import numpy as np
import jax
import jax.numpy as jnp
from jax.experimental import pallas as pl
from jax.experimental.pallas import tpu as pltpu


_LANE = 128
# (2048, 128) f32 block = 1 MiB per array per block; 3 arrays x 2 buffers = 6 MiB VMEM.
_BLOCK_ROWS = 2048


def _sobol_1d(n: int) -> np.ndarray:
    """First n points of the 1-D Sobol sequence (matches torch SobolEngine(1), unscrambled)."""
    v = [1 << (31 - j) for j in range(32)]  # direction numbers for dim 1: m_k = 1
    out = np.zeros(n, dtype=np.float64)
    acc = 0
    for i in range(1, n):
        c = (i & -i).bit_length() - 1  # index of lowest set bit (Gray-code construction)
        acc ^= v[c]
        out[i] = acc / 2.0**32
    return out.astype(np.float32)


def _make_kernel(bipolar: bool, depth: int, thr: float, thr_inv: float):
    depth_f = float(depth)
    thr = float(thr)
    thr_inv = float(thr_inv)

    def kernel(x_ref, p_ref, o_ref):
        # input_0 is a 0/1 unary bitstream stored as float; treat as boolean.
        in0 = x_ref[...] > 0.5
        p = p_ref[...]
        # SourceGen fused into the kernel (saves one full-array HBM round trip).
        if bipolar:
            src = jnp.round((p + 1.0) / 2.0 * depth_f)
        else:
            src = jnp.round(p * depth_f)
        bit = src > thr                         # BSGen: gt(source, rng[rng_idx])
        path = jnp.logical_and(in0, bit)
        if bipolar:
            bit_inv = src > thr_inv             # BSGen_inv: gt(source, rng[rng_idx_inv])
            path_inv = jnp.logical_and(jnp.logical_not(in0), jnp.logical_not(bit_inv))
            res = jnp.logical_or(path, path_inv)
        else:
            res = path
        o_ref[...] = res.astype(o_ref.dtype)    # stype = torch.float

    return kernel


def fsumul_static(input_0, input_prob_1, *, bitwidth=8, mode="bipolar"):
    assert mode in ("unipolar", "bipolar")
    depth = 2 ** bitwidth

    # Fresh-module static state: rng_idx = rng_idx_inv = 0 -> threshold = rng_seq[0]
    # (= 0.0 for Sobol). Compile-time constants, closed over by the kernel.
    rng_seq = _sobol_1d(depth) * depth
    thr = float(rng_seq[0])
    thr_inv = float(rng_seq[0])

    orig_shape = input_0.shape
    n = int(np.prod(orig_shape))

    x = jnp.ravel(input_0).astype(jnp.float32)
    p = jnp.ravel(input_prob_1).astype(jnp.float32)

    # Lane-dense slab (rows, 128); blocks span the full lane dim so each block's
    # HBM DMA is one contiguous 1 MiB chunk and output stores are unmasked.
    rows_total = -(-n // _LANE)
    if rows_total <= _BLOCK_ROWS:
        block_rows = max(rows_total, 1)         # full-extent block (no (8,128) constraint)
        rows_padded = block_rows
    else:
        block_rows = _BLOCK_ROWS
        rows_padded = -(-rows_total // _BLOCK_ROWS) * _BLOCK_ROWS
    n_pad = rows_padded * _LANE
    if n_pad != n:
        pad = n_pad - n
        x = jnp.pad(x, (0, pad))
        p = jnp.pad(p, (0, pad))
    x2 = x.reshape(rows_padded, _LANE)
    p2 = p.reshape(rows_padded, _LANE)

    grid = (rows_padded // block_rows,)

    out2 = pl.pallas_call(
        _make_kernel(mode == "bipolar", depth, thr, thr_inv),
        out_shape=jax.ShapeDtypeStruct((rows_padded, _LANE), jnp.float32),
        grid=grid,
        in_specs=[
            pl.BlockSpec((block_rows, _LANE), lambda i: (i, 0)),   # input_0 (bitstream)
            pl.BlockSpec((block_rows, _LANE), lambda i: (i, 0)),   # input_prob_1
        ],
        out_specs=pl.BlockSpec((block_rows, _LANE), lambda i: (i, 0)),
        compiler_params=pltpu.CompilerParams(
            dimension_semantics=("parallel",),                      # shards across v7x's 2 TCs
            vmem_limit_bytes=32 * 1024 * 1024,
        ),
    )(x2, p2)

    out = out2.reshape(-1)
    if n_pad != n:
        out = out[:n]
    return out.reshape(orig_shape)


def _reference(input_0, input_prob_1, *, bitwidth=8, mode="bipolar"):
    """Pure-numpy reference of FSUMul.forward (static, fresh module)."""
    depth = 2 ** bitwidth
    rng_seq = _sobol_1d(depth) * depth
    if mode == "unipolar":
        source = np.round(np.asarray(input_prob_1, dtype=np.float32) * depth)
    else:
        source = np.round((np.asarray(input_prob_1, dtype=np.float32) + 1.0) / 2.0 * depth)
    in0 = np.asarray(input_0).astype(np.int32)
    bit = (source > rng_seq[0]).astype(np.int32)
    path = in0 & bit
    if mode == "unipolar":
        res = path
    else:
        bit_inv = (source > rng_seq[0]).astype(np.int32)
        path_inv = (1 - in0) & (1 - bit_inv)
        res = path | path_inv
    return res.astype(np.float32)


if __name__ == "__main__":
    key = jax.random.PRNGKey(0)
    k0, k1, k2, k3 = jax.random.split(key, 4)

    # input_0: 0/1 unary bitstream bits; input_prob_1: bipolar probability in [-1, 1]
    shape = (2, 4, 16, 16)
    input_0 = jax.random.bernoulli(k0, p=0.5, shape=shape).astype(jnp.float32)
    input_prob_1 = jax.random.uniform(k1, shape, minval=-1.0, maxval=1.0, dtype=jnp.float32)

    out = fsumul_static(input_0, input_prob_1, bitwidth=8, mode="bipolar")
    out = jax.block_until_ready(out)
    ref = _reference(np.asarray(input_0), np.asarray(input_prob_1), bitwidth=8, mode="bipolar")
    np.testing.assert_allclose(np.asarray(out), ref, rtol=0, atol=0)

    # Ragged shape (exercises the lane-padding path) + unipolar mode.
    shape2 = (3, 5, 7)
    in0_b = jax.random.bernoulli(k2, p=0.5, shape=shape2).astype(jnp.float32)
    prob_b = jax.random.uniform(k3, shape2, minval=0.0, maxval=1.0, dtype=jnp.float32)
    out2 = jax.block_until_ready(fsumul_static(in0_b, prob_b, bitwidth=8, mode="unipolar"))
    ref2 = _reference(np.asarray(in0_b), np.asarray(prob_b), bitwidth=8, mode="unipolar")
    np.testing.assert_allclose(np.asarray(out2), ref2, rtol=0, atol=0)

    print("KERNEL_OK")
</pallas_src>

<mosaic_0001>
module attributes {stable_mosaic.version = 11 : i64} {
  func.func @kernel(%arg0: i32, %arg1: memref<16x128xf32, #tpu.memory_space<vmem>>, %arg2: memref<16x128xf32, #tpu.memory_space<vmem>>, %arg3: memref<16x128xf32, #tpu.memory_space<vmem>>) attributes {dimension_semantics = [#tpu.dimension_semantics<parallel>], iteration_bounds = array<i64: 1>, scalar_prefetch = 0 : i64, scratch_operands = 0 : i64, tpu.core_type = #tpu.core_type<tc>, window_params = [{transform_indices = @transform_0, window_bounds = array<i64: 16, 128>}, {transform_indices = @transform_1, window_bounds = array<i64: 16, 128>}, {transform_indices = @transform_2, window_bounds = array<i64: 16, 128>}]} {
    %c0 = arith.constant 0 : index
    %c0_0 = arith.constant 0 : index
    %0 = vector.load %arg1[%c0, %c0_0] : memref<16x128xf32, #tpu.memory_space<vmem>>, vector<16x128xf32>
    %cst = arith.constant 5.000000e-01 : f32
    %1 = vector.broadcast %cst : f32 to vector<16x128xf32>
    %2 = arith.cmpf ogt, %0, %1 : vector<16x128xf32>
    %c0_1 = arith.constant 0 : index
    %c0_2 = arith.constant 0 : index
    %3 = vector.load %arg2[%c0_1, %c0_2] : memref<16x128xf32, #tpu.memory_space<vmem>>, vector<16x128xf32>
    %cst_3 = arith.constant 1.000000e+00 : f32
    %4 = vector.broadcast %cst_3 : f32 to vector<16x128xf32>
    %5 = arith.addf %3, %4 : vector<16x128xf32>
    %cst_4 = arith.constant 2.000000e+00 : f32
    %6 = vector.broadcast %cst_4 : f32 to vector<16x128xf32>
    %7 = arith.divf %5, %6 : vector<16x128xf32>
    %cst_5 = arith.constant 2.560000e+02 : f32
    %8 = vector.broadcast %cst_5 : f32 to vector<16x128xf32>
    %9 = arith.mulf %7, %8 : vector<16x128xf32>
    %10 = math.roundeven %9 : vector<16x128xf32>
    %cst_6 = arith.constant 0.000000e+00 : f32
    %11 = vector.broadcast %cst_6 : f32 to vector<16x128xf32>
    %12 = arith.cmpf ogt, %10, %11 : vector<16x128xf32>
    %13 = arith.andi %2, %12 : vector<16x128xi1>
    %cst_7 = arith.constant 0.000000e+00 : f32
    %14 = vector.broadcast %cst_7 : f32 to vector<16x128xf32>
    %15 = arith.cmpf ogt, %10, %14 : vector<16x128xf32>
    %cst_8 = arith.constant dense<true> : vector<16x128xi1>
    %16 = arith.xori %2, %cst_8 : vector<16x128xi1>
    %cst_9 = arith.constant dense<true> : vector<16x128xi1>
    %17 = arith.xori %15, %cst_9 : vector<16x128xi1>
    %18 = arith.andi %16, %17 : vector<16x128xi1>
    %19 = arith.ori %13, %18 : vector<16x128xi1>
    %20 = arith.extui %19 : vector<16x128xi1> to vector<16x128xi32>
    %21 = arith.sitofp %20 : vector<16x128xi32> to vector<16x128xf32>
    %c0_10 = arith.constant 0 : index
    %c0_11 = arith.constant 0 : index
    %22 = vector.load %arg3[%c0_10, %c0_11] : memref<16x128xf32, #tpu.memory_space<vmem>>, vector<16x128xf32>
    tpu.vector_store %arg3[%c0_10, %c0_11], %21 {strides = array<i32>} : memref<16x128xf32, #tpu.memory_space<vmem>>, vector<16x128xf32>,
    return
  }
  func.func @transform_0(%arg0: i32) -> (i32, i32) {
    %c0_i32 = arith.constant 0 : i32
    %c0_i32_0 = arith.constant 0 : i32
    return %arg0, %c0_i32 : i32, i32
  }
  func.func @transform_1(%arg0: i32) -> (i32, i32) {
    %c0_i32 = arith.constant 0 : i32
    %c0_i32_0 = arith.constant 0 : i32
    return %arg0, %c0_i32 : i32, i32
  }
  func.func @transform_2(%arg0: i32) -> (i32, i32) {
    %c0_i32 = arith.constant 0 : i32
    %c0_i32_0 = arith.constant 0 : i32
    return %arg0, %c0_i32 : i32, i32
  }
}

</mosaic_0001>

<bundles_post_ra>
// kernel: tpu_custom_call.1
= control target key start
LH: loop header
LB: loop body
LE: loop exit
PB: predicated region body
PF: predicated region fallthrough
CT: control target
= control target key end

     0   :  { %7 = vsyncpa [#allocation3], 0  ;;  %s262_s0 = inlined_call_operand.hbm [shape: f32[16,128], index: 0, kind: input, shape index: {}]   ;;  %s263_s1 = inlined_call_operand.hbm [shape: f32[16,128], index: 1, kind: input, shape index: {}]   ;;  %s264_s2 = inlined_call_operand.hbm [shape: f32[16,128], index: 2, kind: output, shape index: {}]  }
   0x1   :  { %8 = vsyncpa [#allocation6], 0 }
   0x2   :  { %9 = vsyncpa [#allocation4], 0  ;;  %s14_s11 = sshll.u32 %s262_s0, 4  ;;  %s209_s12 = smov [#allocation2]   ;;  %s15_s11 = int_to_ptr.hbm [resolvable:$true] %s14_s11 }
   0x3   :  { %s16_s13 = sshll.u32 %s209_s12, 4  ;;  %s27_s16 = sshll.u32 %s263_s1, 4  ;;  %s17_s13 = int_to_ptr.vmem [resolvable:$true] %s16_s13  ;;  %s28_s16 = int_to_ptr.hbm [resolvable:$true] %s27_s16 }
   0x4   :  { %s210_s17 = smov 128   ;;  %s211_s18 = smov 8  }
   0x5   :  { %22 = dma.hbm_to_vmem [thread:$0]  %s15_s11, 256, %s17_s13, [#allocation3], %s210_s17, %s210_s17, %s211_s18  }
   0x6   :  { %s212_s19 = smov [#allocation5]  }
   0x7   :  { %s29_s20 = sshll.u32 %s212_s19, 4  ;;  %s30_s20 = int_to_ptr.vmem [resolvable:$true] %s29_s20 }
   0x8   :  { %35 = dma.hbm_to_vmem [thread:$0]  %s28_s16, 256, %s30_s20, [#allocation6], %s210_s17, %s210_s17, %s211_s18  }
   0x9   :  { %203 = dma.done.wait [#allocation3], 256  }
   0xa   :  { %204 = vsyncadd [#allocation3], 4294967040 }
   0xb   :  { %205 = dma.done.wait [#allocation6], 256  }
   0xc   :  { %206 = vsyncadd [#allocation6], 4294967040  ;;  %v213_v0 = vmov 2.0   ;;  %v48_v3 = vld [vmem:[#allocation5] sm:$0xff]  ;;  %v49_v5 = vld [vmem:[#allocation5 + $0x8] sm:$0xff]  ;;  %vm214_vm5 = vmmov 1  }
   0xd   :  { %129 = vrcp.f32 %v213_v0  ;;  %v50_v7 = vadd.f32 1.0, %v48_v3  ;;  %v51_v8 = vadd.f32 1.0, %v49_v5  ;;  %v44_v18 = vld [vmem:[#allocation2] sm:$0xff]  ;;  %v45_v22 = vld [vmem:[#allocation2 + $0x8] sm:$0xff]  ;;  %v215_v32 = vmov 0.0   ;;  %s216_s0 = smov [#allocation7]  }
   0xe   :  { %vm46_vm1 = vcmp.gt.f32.partialorder %v44_v18, 0.5  ;;  %vm47_vm3 = vcmp.gt.f32.partialorder %v45_v22, 0.5  ;;  %s87_s1 = sshll.u32 %s216_s0, 4  ;;  %s89_s23 = sshll.u32 %s264_s2, 4  ;;  %s88_s1 = int_to_ptr.vmem [resolvable:$true] %s87_s1  ;;  %s90_s23 = int_to_ptr.hbm [resolvable:$true] %s89_s23 }
   0xf   :  { %vm69_vm6 = vmxor %vm46_vm1, %vm214_vm5 }
  0x10   :  { %vm247_vm8 = vmxor %vm47_vm3, %vm214_vm5 }
  0x13   :  { %v130_v1 = vpop.eup %129 }
  0x14   :  { %v53_v2 = vmul.f32 2.0, %v130_v1  ;;  %vm57_vm0 = vweird.f32 %v130_v1 }
  0x16   :  { %v54_v4 = vsub.f32 1.0, %v53_v2 }
  0x18   :  { %v55_v6 = vmul.f32 %v130_v1, %v54_v4 }
  0x1a   :  { %v56_v9 = vadd.f32 %v130_v1, %v55_v6 }
  0x1c   :  { %v58_v10 = vsel %vm57_vm0, %v130_v1, %v56_v9 }
  0x1d   :  { %v59_v11 = vmul.f32 %v58_v10, %v50_v7  ;;  %v60_v12 = vmul.f32 %v58_v10, %v51_v8 }
  0x1f   :  { %v61_v13 = vmul.f32 256.0, %v59_v11  ;;  %v62_v14 = vmul.f32 256.0, %v60_v12 }
  0x21   :  { %v107_v15 = vcvt.f32.s32 %v61_v13  ;;  %v105_v16 = vand.u32 2147483647, %v61_v13  ;;  %v115_v17 = vcvt.f32.s32 %v62_v14  ;;  %v110_v20 = vand.u32 2147483648, %v61_v13 }
  0x22   :  { %v113_v21 = vand.u32 2147483647, %v62_v14  ;;  %v118_v24 = vand.u32 2147483648, %v62_v14 }
  0x23   :  { %v108_v19 = vcvt.s32.f32 %v107_v15  ;;  %v116_v23 = vcvt.s32.f32 %v115_v17  ;;  %vm106_vm2 = vcmp.lt.f32.partialorder %v105_v16, 8388608.0 }
  0x24   :  { %vm114_vm4 = vcmp.lt.f32.partialorder %v113_v21, 8388608.0 }
  0x25   :  { %v109_v25 = vand.u32 2147483647, %v108_v19  ;;  %v117_v26 = vand.u32 2147483647, %v116_v23 }
  0x27   :  { %v111_v27 = vor.u32 %v110_v20, %v109_v25  ;;  %v119_v28 = vor.u32 %v118_v24, %v117_v26 }
  0x29   :  { %v112_v29 = vsel %vm106_vm2, %v111_v27, %v61_v13  ;;  %v120_v30 = vsel %vm114_vm4, %v119_v28, %v62_v14 }
  0x2a   :  { %vm65_vm7 = vcmp.gt.f32.partialorder %v112_v29, 0.0  ;;  %vm66_vm11 = vcmp.gt.f32.partialorder %v120_v30, 0.0 }
  0x2b   :  { %vm67_vm9 = vmand %vm46_vm1, %vm65_vm7 }
  0x2c   :  { %vm71_vm10 = vmxor %vm65_vm7, %vm214_vm5 }
  0x2d   :  { %vm73_vm12 = vmand %vm69_vm6, %vm71_vm10 }
  0x2e   :  { %vm75_vm13 = vmor %vm67_vm9, %vm73_vm12 }
  0x2f   :  { %v103_v33 = vsel %vm75_vm13, 1.0, %v215_v32  ;;  %vm68_vm14 = vmand %vm47_vm3, %vm66_vm11 }
  0x30   :  { %81 = vst [vmem:[#allocation7] sm:$0xff] %v103_v33  ;;  %vm72_vm15 = vmxor %vm66_vm11, %vm214_vm5 }
  0x31   :  { %vm74_vm0 = vmand %vm247_vm8, %vm72_vm15 }
  0x32   :  { %vm76_vm1 = vmor %vm68_vm14, %vm74_vm0 }
  0x33   :  { %v104_v34 = vsel %vm76_vm1, 1.0, %v215_v32 }
  0x34   :  { %82 = vst [vmem:[#allocation7 + $0x8] sm:$0xff] %v104_v34 }
  0x35   :  { %95 = dma.vmem_to_hbm [thread:$0]  %s88_s1, 256, %s90_s23, [#allocation4], %s210_s17, %s210_s17, %s211_s18  }
  0x36   :  { %207 = dma.done.wait [#allocation4], 256  }
  0x37   :  { %208 = vsyncadd [#allocation4], 4294967040 }
  0x38   :  { %100 = vsyncpa [#allocation3], 1 }
  0x39   :  { %101 = vsyncpa [#allocation6], 1 }
  0x3a   :  { %102 = vsyncpa [#allocation4], 1 }

</bundles_post_ra>
